<compile_context>
chip_gen: v7x
topology: tpu7x:2x2x1
jax: 0.10.0
libtpu: 0.0.40
codegen_flags: <defaults>
</compile_context>

<pallas_src>
import math

import jax
import jax.numpy as jnp
from jax import lax
from jax.experimental import pallas as pl
from jax.experimental.pallas import tpu as pltpu


# ----------------------------------------------------------------------------
# Small helpers
# ----------------------------------------------------------------------------
def _sigmoid(x):
    # sigmoid(x) == 0.5 * tanh(0.5 * x) + 0.5 : exactly one EUP op per element
    # (the scale/shift rides on the VPU) instead of an exp + reciprocal pair.
    return 0.5 * jnp.tanh(0.5 * x) + 0.5


def _permute_ifgo_to_ifog(w):
    """Reorder the trailing 4H gate axis from PyTorch's [i, f, g, o] to
    [i, f, o, g] so sigmoid covers a contiguous [0:3H] slice, tanh [3H:4H]."""
    H = w.shape[-1] // 4
    return jnp.concatenate(
        [w[..., :2 * H], w[..., 3 * H:], w[..., 2 * H:3 * H]], axis=-1)


def _largest_divisor_not_exceeding(n, cap):
    cap = max(1, min(n, int(cap)))
    for t in range(cap, 0, -1):
        if n % t == 0:
            return t
    return 1


def _vmem_capacity_bytes():
    try:
        cap = int(pltpu.get_tpu_info().vmem_capacity_bytes)
        if cap > 0:
            return cap
    except Exception:
        pass
    return 64 * 1024 * 1024        # conservative (v7x per-TensorCore) fallback


# ----------------------------------------------------------------------------
# Kernel
# ----------------------------------------------------------------------------
def _make_kernel(fuse_projection):
    """Fused bidirectional-LSTM recurrence + classification head.

    Streamed inputs (time-major):
      xf_ref : (tt, tb, H)  x tile for the forward direction (seq block t)
      xb_ref : (tt, tb, H)  x tile for the backward direction (seq block N-1-t)
    Resident weights (per direction, gate columns [i, f, o, g]):
      wif/wib : (H, 4H)  input  projections
      whf/whb : (H, 4H)  recurrent projections
      bf/bb   : (1, 4H)  summed biases (b_ih + b_hh)
    Head: w1f/w1b (H, H) fwd/bwd halves of fc1, b1 (1, H), w2 (H, L), b2 (1, L).
    Scratch: optional gate tiles (tt*tb, 4H) f32, plus h/c carries (tb, H) f32.
    """

    def kernel(xf_ref, xb_ref, wif_ref, wib_ref, whf_ref, whb_ref,
               bf_ref, bb_ref, w1f_ref, w1b_ref, b1_ref, w2_ref, b2_ref,
               out_ref, *scratch):
        if fuse_projection:
            gf_scr, gb_scr, hf_scr, cf_scr, hb_scr, cb_scr = scratch
        else:
            hf_scr, cf_scr, hb_scr, cb_scr = scratch

        tt, tb, H = xf_ref.shape
        H3 = 3 * H
        t_blk = pl.program_id(1)

        # Reset the recurrent state at the start of every batch-tile sequence.
        @pl.when(t_blk == 0)
        def _init():
            hf_scr[...] = jnp.zeros_like(hf_scr)
            cf_scr[...] = jnp.zeros_like(cf_scr)
            hb_scr[...] = jnp.zeros_like(hb_scr)
            cb_scr[...] = jnp.zeros_like(cb_scr)

        mm = wif_ref.dtype                     # matmul operand dtype
        whf = whf_ref[...]
        whb = whb_ref[...]
        bfv = bf_ref[...]
        bbv = bb_ref[...]

        if fuse_projection:
            # Whole-tile input projection: one large-M (M = tt*tb) MXU matmul
            # per direction into VMEM scratch, so only h @ W_hh remains on the
            # serial critical path.  tb % 8 == 0 makes the reshape a pure
            # relabeling of the (sublane, lane) layout.
            xf2 = xf_ref[...].reshape(tt * tb, H)
            xb2 = xb_ref[...].reshape(tt * tb, H)
            gf_scr[...] = (jnp.dot(xf2, wif_ref[...],
                                   preferred_element_type=jnp.float32) + bfv)
            gb_scr[...] = (jnp.dot(xb2, wib_ref[...],
                                   preferred_element_type=jnp.float32) + bbv)

            def gates_at(s):
                of = pl.multiple_of(s * tb, tb)
                ob = pl.multiple_of((tt - 1 - s) * tb, tb)
                return gf_scr[pl.ds(of, tb), :], gb_scr[pl.ds(ob, tb), :]
        else:
            # Small / non-8-aligned batch tile: per-step projection dots.
            # They do not depend on h, so they sit off the serial h-chain.
            wif = wif_ref[...]
            wib = wib_ref[...]

            def gates_at(s):
                gf = jnp.dot(xf_ref[s], wif,
                             preferred_element_type=jnp.float32) + bfv
                gb = jnp.dot(xb_ref[tt - 1 - s], wib,
                             preferred_element_type=jnp.float32) + bbv
                return gf, gb

        def lstm_cell(g, c):
            sg = _sigmoid(g[:, :H3])           # [i | f | o]  (one EUP pass)
            gg = jnp.tanh(g[:, H3:])           # g            (one EUP pass)
            c_new = sg[:, H:2 * H] * c + sg[:, :H] * gg
            h_new = sg[:, 2 * H:H3] * jnp.tanh(c_new)
            return h_new, c_new

        def step(s, carry):
            hf, cf, hb, cb = carry
            gf, gb = gates_at(s)
            # Two independent recurrent matmuls (fwd / bwd): no zero-padded
            # fused weight, and two dependency chains the scheduler can overlap.
            gf = gf + jnp.dot(hf.astype(mm), whf,
                              preferred_element_type=jnp.float32)
            gb = gb + jnp.dot(hb.astype(mm), whb,
                              preferred_element_type=jnp.float32)
            hf, cf = lstm_cell(gf, cf)
            hb, cb = lstm_cell(gb, cb)
            return hf, cf, hb, cb

        hf, cf, hb, cb = lax.fori_loop(
            0, tt, step,
            (hf_scr[...], cf_scr[...], hb_scr[...], cb_scr[...]))
        hf_scr[...] = hf
        cf_scr[...] = cf
        hb_scr[...] = hb
        cb_scr[...] = cb

        # Classification head, only once the whole sequence has been consumed.
        @pl.when(t_blk == pl.num_programs(1) - 1)
        def _head():
            af = jnp.tanh(hf_scr[...])         # == tanh(output[:, -1, :H])
            ab = jnp.tanh(hb_scr[...])         # == tanh(output[:,  0, H:])
            y = (jnp.dot(af.astype(mm), w1f_ref[...],
                         preferred_element_type=jnp.float32)
                 + jnp.dot(ab.astype(mm), w1b_ref[...],
                           preferred_element_type=jnp.float32)
                 + b1_ref[...])
            # Dropout layers are identity in eval/inference mode.
            out_ref[...] = (jnp.dot(y.astype(mm), w2_ref[...],
                                    preferred_element_type=jnp.float32)
                            + b2_ref[...])

    return kernel


# ----------------------------------------------------------------------------
# Public entry point
# ----------------------------------------------------------------------------
def roberta_bidir_lstm_head(features, params, all_tokens=True,
                            seq_tile=None, batch_tile=None, use_bf16=None):
    """features: (B, T, H) float. Returns (B, num_labels) float32 logits.

    On v7x pass batch_tile=B//2 (a multiple of 8) so the 'parallel' batch grid
    axis feeds both TensorCores; on single-TC parts leave batch_tile=None.
    """
    if not all_tokens:
        features = features[:, 0:1, :]      # x = features[:, 0, :].unsqueeze(1)
    B, T, H = features.shape
    L = params["fc2_b"].shape[-1]

    if use_bf16 is None:
        # bf16 MXU operands on real TPUs; plain f32 elsewhere (CPU interpret
        # runs reject bf16 x bf16 -> f32 dots).
        use_bf16 = jax.default_backend() == "tpu"
    mm_dtype = jnp.bfloat16 if use_bf16 else jnp.float32
    wbytes = 2 if use_bf16 else 4

    # ---- parameters: permute gate columns to [i,f,o,g], split fc1 ----------
    wif = _permute_ifgo_to_ifog(params["wih_f"]).astype(mm_dtype)   # (H, 4H)
    wib = _permute_ifgo_to_ifog(params["wih_b"]).astype(mm_dtype)
    whf = _permute_ifgo_to_ifog(params["whh_f"]).astype(mm_dtype)
    whb = _permute_ifgo_to_ifog(params["whh_b"]).astype(mm_dtype)
    b_f = _permute_ifgo_to_ifog(params["b_f"]).astype(jnp.float32)  # (1, 4H)
    b_b = _permute_ifgo_to_ifog(params["b_b"]).astype(jnp.float32)
    w1f = params["fc1_w"][:H].astype(mm_dtype)                      # (H, H)
    w1b = params["fc1_w"][H:].astype(mm_dtype)                      # (H, H)
    b1 = params["fc1_b"].astype(jnp.float32)                        # (1, H)
    w2 = params["fc2_w"].astype(mm_dtype)                           # (H, L)
    b2 = params["fc2_b"].astype(jnp.float32)                        # (1, L)

    # Time-major raw-x stream; no (T, B, 8H) gate tensor is ever materialized.
    xt = jnp.transpose(features.astype(mm_dtype), (1, 0, 2))        # (T, B, H)

    # ---- tiling / VMEM plan -------------------------------------------------
    tb = B
    if batch_tile is not None and B % batch_tile == 0 and \
            (batch_tile == B or batch_tile % 8 == 0):
        tb = batch_tile
    fuse_projection = (tb % 8 == 0)

    # Resident weights (assume double-buffered), biases, carries, output;
    # per-seq-tile: two double-buffered x streams (+ f32 gate scratch when the
    # whole-tile projection path is used).
    fixed = 2 * (16 * H * H + 2 * H * H + H * L) * wbytes
    fixed += 2 * (8 * H + H + L) * 4
    fixed += 4 * tb * H * 4 + 2 * tb * L * 4
    per_tt = 2 * 2 * tb * H * wbytes
    if fuse_projection:
        per_tt += 2 * tb * 4 * H * 4

    cap = _vmem_capacity_bytes()
    if seq_tile is None:
        budget = int(cap * 0.8) - fixed
        seq_tile = min(256, max(1, budget // per_tt))
    tt = _largest_divisor_not_exceeding(T, seq_tile)
    num_t = T // tt

    vmem_limit = fixed + per_tt * tt + (4 << 20)
    vmem_limit = int(max(16 << 20, min(vmem_limit, cap - (8 << 20))))

    grid = (B // tb, num_t)

    scratch = []
    if fuse_projection:
        scratch += [pltpu.VMEM((tt * tb, 4 * H), jnp.float32),      # fwd gates
                    pltpu.VMEM((tt * tb, 4 * H), jnp.float32)]      # bwd gates
    scratch += [pltpu.VMEM((tb, H), jnp.float32)] * 4               # hf,cf,hb,cb

    def res_spec(shape):
        return pl.BlockSpec(shape, lambda b, t: (0,) * len(shape))

    return pl.pallas_call(
        _make_kernel(fuse_projection),
        out_shape=jax.ShapeDtypeStruct((B, L), jnp.float32),
        grid_spec=pltpu.PrefetchScalarGridSpec(
            num_scalar_prefetch=0,
            grid=grid,
            in_specs=[
                # forward x stream: seq block t
                pl.BlockSpec((tt, tb, H), lambda b, t: (t, b, 0)),
                # backward x stream: seq block N-1-t (time reversal via index_map)
                pl.BlockSpec((tt, tb, H), lambda b, t: (num_t - 1 - t, b, 0)),
                res_spec((H, 4 * H)), res_spec((H, 4 * H)),          # W_ih f/b
                res_spec((H, 4 * H)), res_spec((H, 4 * H)),          # W_hh f/b
                res_spec((1, 4 * H)), res_spec((1, 4 * H)),          # biases
                res_spec((H, H)), res_spec((H, H)), res_spec((1, H)),  # fc1
                res_spec((H, L)), res_spec((1, L)),                  # fc2
            ],
            out_specs=pl.BlockSpec((tb, L), lambda b, t: (b, 0)),
            scratch_shapes=scratch,
        ),
        compiler_params=pltpu.CompilerParams(
            dimension_semantics=("parallel", "arbitrary"),
            vmem_limit_bytes=vmem_limit,
        ),
    )(xt, xt, wif, wib, whf, whb, b_f, b_b, w1f, w1b, b1, w2, b2)


# ----------------------------------------------------------------------------
# Parameter init (matches the PyTorch parameter shapes) and pure-JAX reference
# ----------------------------------------------------------------------------
def init_params(key, hidden_size, num_labels):
    """Deterministic synthetic init matching the PyTorch parameter shapes."""
    H, L = hidden_size, num_labels
    ks = jax.random.split(key, 12)
    bound_lstm = 1.0 / math.sqrt(H)

    def u(k, shape, bound):
        return jax.random.uniform(k, shape, jnp.float32, -bound, bound)

    # nn.LSTM(H, H, bidirectional): weight_ih_l0 (4H,H), weight_hh_l0 (4H,H),
    # bias_ih_l0 (4H,), bias_hh_l0 (4H,) + *_reverse copies. Gate order [i,f,g,o].
    return {
        "wih_f": u(ks[0], (4 * H, H), bound_lstm).T,                  # (H, 4H)
        "whh_f": u(ks[1], (4 * H, H), bound_lstm).T,
        "b_f": (u(ks[2], (4 * H,), bound_lstm)
                + u(ks[3], (4 * H,), bound_lstm)).reshape(1, 4 * H),
        "wih_b": u(ks[4], (4 * H, H), bound_lstm).T,
        "whh_b": u(ks[5], (4 * H, H), bound_lstm).T,
        "b_b": (u(ks[6], (4 * H,), bound_lstm)
                + u(ks[7], (4 * H,), bound_lstm)).reshape(1, 4 * H),
        # fc1: Linear(2H, H) — weight (H, 2H) -> transposed (2H, H)
        "fc1_w": u(ks[8], (H, 2 * H), 1.0 / math.sqrt(2 * H)).T,
        "fc1_b": u(ks[9], (H,), 1.0 / math.sqrt(2 * H)).reshape(1, H),
        # fc2: Linear(H, L) — weight (L, H) -> transposed (H, L)
        "fc2_w": u(ks[10], (L, H), 1.0 / math.sqrt(H)).T,
        "fc2_b": u(ks[11], (L,), 1.0 / math.sqrt(H)).reshape(1, L),
    }


def _reference(features, params):
    """Pure-JAX f32 reference of the same forward pass (sanity check)."""
    x = features.astype(jnp.float32)
    B, T, H = x.shape

    def run_dir(xs, wih, whh, b):
        def step(carry, x_t):
            h, c = carry
            g = x_t @ wih + h @ whh + b
            i = jax.nn.sigmoid(g[:, :H])
            f = jax.nn.sigmoid(g[:, H:2 * H])
            gg = jnp.tanh(g[:, 2 * H:3 * H])
            o = jax.nn.sigmoid(g[:, 3 * H:])
            c = f * c + i * gg
            h = o * jnp.tanh(c)
            return (h, c), None
        (h, _), _ = lax.scan(step, (jnp.zeros((B, H)), jnp.zeros((B, H))), xs)
        return h

    xs = jnp.transpose(x, (1, 0, 2))
    h_f = run_dir(xs, params["wih_f"], params["whh_f"], params["b_f"])
    h_b = run_dir(xs[::-1], params["wih_b"], params["whh_b"], params["b_b"])
    a = jnp.tanh(jnp.concatenate([h_f, h_b], axis=-1))
    y = a @ params["fc1_w"] + params["fc1_b"]
    return y @ params["fc2_w"] + params["fc2_b"]


if __name__ == "__main__":
    base_key = jax.random.PRNGKey(0)
    on_tpu = jax.default_backend() == "tpu"

    def check(B, T, H, L, seq_tile, batch_tile=None):
        kf, kp = jax.random.split(jax.random.fold_in(base_key, B * 1000 + T))
        feats = jax.random.normal(kf, (B, T, H), dtype=jnp.float32)
        p = init_params(kp, H, L)
        ref = _reference(feats, p)

        # f32 structural check (tight tolerance; valid on every backend).
        out32 = jax.block_until_ready(
            roberta_bidir_lstm_head(feats, p, all_tokens=True,
                                    seq_tile=seq_tile, batch_tile=batch_tile,
                                    use_bf16=False))
        assert out32.shape == (B, L)
        assert jnp.allclose(out32, ref, atol=2e-3, rtol=2e-3), (out32, ref)

        # Default path: bf16 MXU operands on real TPUs, f32 elsewhere.
        out = jax.block_until_ready(
            roberta_bidir_lstm_head(feats, p, all_tokens=True,
                                    seq_tile=seq_tile, batch_tile=batch_tile))
        assert out.shape == (B, L)
        tol = 5e-2 if on_tpu else 2e-3
        assert jnp.allclose(out, ref, atol=tol, rtol=tol), (out, ref)

    # Small-batch path (per-step in-kernel input projection), 2 seq blocks.
    check(B=2, T=8, H=32, L=4, seq_tile=4)
    # 8-aligned batch tiles (whole-tile fused projection), 3 seq blocks and a
    # batch-parallel grid axis of size 2.
    check(B=16, T=12, H=32, L=4, seq_tile=4, batch_tile=8)

    print("KERNEL_OK")
</pallas_src>

<mosaic_0001>
module attributes {stable_mosaic.version = 11 : i64} {
  func.func @kernel(%arg0: i32, %arg1: i32, %arg2: memref<4x2x32xf32, #tpu.memory_space<vmem>>, %arg3: memref<4x2x32xf32, #tpu.memory_space<vmem>>, %arg4: memref<32x128xf32, #tpu.memory_space<vmem>>, %arg5: memref<32x128xf32, #tpu.memory_space<vmem>>, %arg6: memref<32x128xf32, #tpu.memory_space<vmem>>, %arg7: memref<32x128xf32, #tpu.memory_space<vmem>>, %arg8: memref<1x128xf32, #tpu.memory_space<vmem>>, %arg9: memref<1x128xf32, #tpu.memory_space<vmem>>, %arg10: memref<32x32xf32, #tpu.memory_space<vmem>>, %arg11: memref<32x32xf32, #tpu.memory_space<vmem>>, %arg12: memref<1x32xf32, #tpu.memory_space<vmem>>, %arg13: memref<32x4xf32, #tpu.memory_space<vmem>>, %arg14: memref<1x4xf32, #tpu.memory_space<vmem>>, %arg15: memref<2x4xf32, #tpu.memory_space<vmem>>, %arg16: memref<2x32xf32, #tpu.memory_space<vmem>>, %arg17: memref<2x32xf32, #tpu.memory_space<vmem>>, %arg18: memref<2x32xf32, #tpu.memory_space<vmem>>, %arg19: memref<2x32xf32, #tpu.memory_space<vmem>>) attributes {dimension_semantics = [#tpu.dimension_semantics<parallel>, #tpu.dimension_semantics<arbitrary>], iteration_bounds = array<i64: 1, 2>, scalar_prefetch = 0 : i64, scratch_operands = 4 : i64, tpu.core_type = #tpu.core_type<tc>, window_params = [{transform_indices = @transform_0, window_bounds = array<i64: 4, 2, 32>}, {transform_indices = @transform_1, window_bounds = array<i64: 4, 2, 32>}, {pipeline_mode = #tpu.pipeline_mode<synchronous>, transform_indices = @transform_2, window_bounds = array<i64: 32, 128>}, {pipeline_mode = #tpu.pipeline_mode<synchronous>, transform_indices = @transform_3, window_bounds = array<i64: 32, 128>}, {pipeline_mode = #tpu.pipeline_mode<synchronous>, transform_indices = @transform_4, window_bounds = array<i64: 32, 128>}, {pipeline_mode = #tpu.pipeline_mode<synchronous>, transform_indices = @transform_5, window_bounds = array<i64: 32, 128>}, {pipeline_mode = #tpu.pipeline_mode<synchronous>, transform_indices = @transform_6, window_bounds = array<i64: 1, 128>}, {pipeline_mode = #tpu.pipeline_mode<synchronous>, transform_indices = @transform_7, window_bounds = array<i64: 1, 128>}, {pipeline_mode = #tpu.pipeline_mode<synchronous>, transform_indices = @transform_8, window_bounds = array<i64: 32, 32>}, {pipeline_mode = #tpu.pipeline_mode<synchronous>, transform_indices = @transform_9, window_bounds = array<i64: 32, 32>}, {pipeline_mode = #tpu.pipeline_mode<synchronous>, transform_indices = @transform_10, window_bounds = array<i64: 1, 32>}, {pipeline_mode = #tpu.pipeline_mode<synchronous>, transform_indices = @transform_11, window_bounds = array<i64: 32, 4>}, {pipeline_mode = #tpu.pipeline_mode<synchronous>, transform_indices = @transform_12, window_bounds = array<i64: 1, 4>}, {transform_indices = @transform_13, window_bounds = array<i64: 2, 4>}]} {
    %c0_i32 = arith.constant 0 : i32
    %0 = arith.cmpi eq, %arg1, %c0_i32 : i32
    %1 = arith.extui %0 : i1 to i32
    %c0_i32_0 = arith.constant 0 : i32
    %2 = arith.cmpi ne, %1, %c0_i32_0 : i32
    scf.if %2 {
      %cst = arith.constant 0.000000e+00 : f32
      %22 = vector.broadcast %cst : f32 to vector<2x32xf32>
      %c0_32 = arith.constant 0 : index
      %c0_33 = arith.constant 0 : index
      %23 = vector.load %arg16[%c0_32, %c0_33] : memref<2x32xf32, #tpu.memory_space<vmem>>, vector<2x32xf32>
      tpu.vector_store %arg16[%c0_32, %c0_33], %22 {strides = array<i32>} : memref<2x32xf32, #tpu.memory_space<vmem>>, vector<2x32xf32>,
      %cst_34 = arith.constant 0.000000e+00 : f32
      %24 = vector.broadcast %cst_34 : f32 to vector<2x32xf32>
      %c0_35 = arith.constant 0 : index
      %c0_36 = arith.constant 0 : index
      %25 = vector.load %arg17[%c0_35, %c0_36] : memref<2x32xf32, #tpu.memory_space<vmem>>, vector<2x32xf32>
      tpu.vector_store %arg17[%c0_35, %c0_36], %24 {strides = array<i32>} : memref<2x32xf32, #tpu.memory_space<vmem>>, vector<2x32xf32>,
      %cst_37 = arith.constant 0.000000e+00 : f32
      %26 = vector.broadcast %cst_37 : f32 to vector<2x32xf32>
      %c0_38 = arith.constant 0 : index
      %c0_39 = arith.constant 0 : index
      %27 = vector.load %arg18[%c0_38, %c0_39] : memref<2x32xf32, #tpu.memory_space<vmem>>, vector<2x32xf32>
      tpu.vector_store %arg18[%c0_38, %c0_39], %26 {strides = array<i32>} : memref<2x32xf32, #tpu.memory_space<vmem>>, vector<2x32xf32>,
      %cst_40 = arith.constant 0.000000e+00 : f32
      %28 = vector.broadcast %cst_40 : f32 to vector<2x32xf32>
      %c0_41 = arith.constant 0 : index
      %c0_42 = arith.constant 0 : index
      %29 = vector.load %arg19[%c0_41, %c0_42] : memref<2x32xf32, #tpu.memory_space<vmem>>, vector<2x32xf32>
      tpu.vector_store %arg19[%c0_41, %c0_42], %28 {strides = array<i32>} : memref<2x32xf32, #tpu.memory_space<vmem>>, vector<2x32xf32>,
    } else {
    }
    %c0 = arith.constant 0 : index
    %c0_1 = arith.constant 0 : index
    %3 = vector.load %arg6[%c0, %c0_1] : memref<32x128xf32, #tpu.memory_space<vmem>>, vector<32x128xf32>
    %c0_2 = arith.constant 0 : index
    %c0_3 = arith.constant 0 : index
    %4 = vector.load %arg7[%c0_2, %c0_3] : memref<32x128xf32, #tpu.memory_space<vmem>>, vector<32x128xf32>
    %c0_4 = arith.constant 0 : index
    %c0_5 = arith.constant 0 : index
    %5 = vector.load %arg8[%c0_4, %c0_5] : memref<1x128xf32, #tpu.memory_space<vmem>>, vector<1x128xf32>
    %c0_6 = arith.constant 0 : index
    %c0_7 = arith.constant 0 : index
    %6 = vector.load %arg9[%c0_6, %c0_7] : memref<1x128xf32, #tpu.memory_space<vmem>>, vector<1x128xf32>
    %c0_8 = arith.constant 0 : index
    %c0_9 = arith.constant 0 : index
    %7 = vector.load %arg4[%c0_8, %c0_9] : memref<32x128xf32, #tpu.memory_space<vmem>>, vector<32x128xf32>
    %c0_10 = arith.constant 0 : index
    %c0_11 = arith.constant 0 : index
    %8 = vector.load %arg5[%c0_10, %c0_11] : memref<32x128xf32, #tpu.memory_space<vmem>>, vector<32x128xf32>
    %c0_12 = arith.constant 0 : index
    %c0_13 = arith.constant 0 : index
    %9 = vector.load %arg16[%c0_12, %c0_13] : memref<2x32xf32, #tpu.memory_space<vmem>>, vector<2x32xf32>
    %c0_14 = arith.constant 0 : index
    %c0_15 = arith.constant 0 : index
    %10 = vector.load %arg17[%c0_14, %c0_15] : memref<2x32xf32, #tpu.memory_space<vmem>>, vector<2x32xf32>
    %c0_16 = arith.constant 0 : index
    %c0_17 = arith.constant 0 : index
    %11 = vector.load %arg18[%c0_16, %c0_17] : memref<2x32xf32, #tpu.memory_space<vmem>>, vector<2x32xf32>
    %c0_18 = arith.constant 0 : index
    %c0_19 = arith.constant 0 : index
    %12 = vector.load %arg19[%c0_18, %c0_19] : memref<2x32xf32, #tpu.memory_space<vmem>>, vector<2x32xf32>
    %c0_i32_20 = arith.constant 0 : i32
    %c4_i32 = arith.constant 4 : i32
    %13 = arith.addi %c0_i32_20, %c4_i32 : i32
    %c1_i32 = arith.constant 1 : i32
    %14:4 = scf.for %arg20 = %c0_i32_20 to %13 step %c1_i32 iter_args(%arg21 = %9, %arg22 = %10, %arg23 = %11, %arg24 = %12) -> (vector<2x32xf32>, vector<2x32xf32>, vector<2x32xf32>, vector<2x32xf32>)  : i32 {
      %22 = arith.index_cast %arg20 : i32 to index
      %c0_32 = arith.constant 0 : index
      %c0_33 = arith.constant 0 : index
      %23 = vector.load %arg2[%22, %c0_32, %c0_33] : memref<4x2x32xf32, #tpu.memory_space<vmem>>, vector<1x2x32xf32>
      %24 = vector.shape_cast %23 : vector<1x2x32xf32> to vector<2x32xf32>
      %cst = arith.constant dense<0.000000e+00> : vector<2x128xf32>
      %25 = tpu.matmul %24, %7, %cst {dimension_numbers = #tpu.dot_dimension_numbers<[1], [0], [0], [1], [0, 0, 1, 1], [], []>} : vector<2x32xf32>, vector<32x128xf32>, vector<2x128xf32> -> vector<2x128xf32>
      %26 = vector.broadcast %5 : vector<1x128xf32> to vector<2x128xf32>
      %27 = arith.addf %25, %26 : vector<2x128xf32>
      %c3_i32 = arith.constant 3 : i32
      %28 = arith.subi %c3_i32, %arg20 : i32
      %29 = arith.index_cast %28 : i32 to index
      %c0_34 = arith.constant 0 : index
      %c0_35 = arith.constant 0 : index
      %30 = vector.load %arg3[%29, %c0_34, %c0_35] : memref<4x2x32xf32, #tpu.memory_space<vmem>>, vector<1x2x32xf32>
      %31 = vector.shape_cast %30 : vector<1x2x32xf32> to vector<2x32xf32>
      %cst_36 = arith.constant dense<0.000000e+00> : vector<2x128xf32>
      %32 = tpu.matmul %31, %8, %cst_36 {dimension_numbers = #tpu.dot_dimension_numbers<[1], [0], [0], [1], [0, 0, 1, 1], [], []>} : vector<2x32xf32>, vector<32x128xf32>, vector<2x128xf32> -> vector<2x128xf32>
      %33 = vector.broadcast %6 : vector<1x128xf32> to vector<2x128xf32>
      %34 = arith.addf %32, %33 : vector<2x128xf32>
      %cst_37 = arith.constant dense<0.000000e+00> : vector<2x128xf32>
      %35 = tpu.matmul %arg21, %3, %cst_37 {dimension_numbers = #tpu.dot_dimension_numbers<[1], [0], [0], [1], [0, 0, 1, 1], [], []>} : vector<2x32xf32>, vector<32x128xf32>, vector<2x128xf32> -> vector<2x128xf32>
      %36 = arith.addf %27, %35 : vector<2x128xf32>
      %cst_38 = arith.constant dense<0.000000e+00> : vector<2x128xf32>
      %37 = tpu.matmul %arg23, %4, %cst_38 {dimension_numbers = #tpu.dot_dimension_numbers<[1], [0], [0], [1], [0, 0, 1, 1], [], []>} : vector<2x32xf32>, vector<32x128xf32>, vector<2x128xf32> -> vector<2x128xf32>
      %38 = arith.addf %34, %37 : vector<2x128xf32>
      %39 = vector.extract_strided_slice %36 {offsets = [0, 0], sizes = [2, 96], strides = [1, 1]} : vector<2x128xf32> to vector<2x96xf32>
      %cst_39 = arith.constant 5.000000e-01 : f32
      %40 = vector.broadcast %cst_39 : f32 to vector<2x96xf32>
      %41 = arith.mulf %40, %39 : vector<2x96xf32>
      %42 = math.tanh %41 : vector<2x96xf32>
      %cst_40 = arith.constant 5.000000e-01 : f32
      %43 = vector.broadcast %cst_40 : f32 to vector<2x96xf32>
      %44 = arith.mulf %43, %42 : vector<2x96xf32>
      %cst_41 = arith.constant 5.000000e-01 : f32
      %45 = vector.broadcast %cst_41 : f32 to vector<2x96xf32>
      %46 = arith.addf %44, %45 : vector<2x96xf32>
      %47 = vector.extract_strided_slice %36 {offsets = [0, 96], sizes = [2, 32], strides = [1, 1]} : vector<2x128xf32> to vector<2x32xf32>
      %48 = math.tanh %47 : vector<2x32xf32>
      %49 = vector.extract_strided_slice %46 {offsets = [0, 32], sizes = [2, 32], strides = [1, 1]} : vector<2x96xf32> to vector<2x32xf32>
      %50 = arith.mulf %49, %arg22 : vector<2x32xf32>
      %51 = vector.extract_strided_slice %46 {offsets = [0, 0], sizes = [2, 32], strides = [1, 1]} : vector<2x96xf32> to vector<2x32xf32>
      %52 = arith.mulf %51, %48 : vector<2x32xf32>
      %53 = arith.addf %50, %52 : vector<2x32xf32>
      %54 = vector.extract_strided_slice %46 {offsets = [0, 64], sizes = [2, 32], strides = [1, 1]} : vector<2x96xf32> to vector<2x32xf32>
      %55 = math.tanh %53 : vector<2x32xf32>
      %56 = arith.mulf %54, %55 : vector<2x32xf32>
      %57 = vector.extract_strided_slice %38 {offsets = [0, 0], sizes = [2, 96], strides = [1, 1]} : vector<2x128xf32> to vector<2x96xf32>
      %cst_42 = arith.constant 5.000000e-01 : f32
      %58 = vector.broadcast %cst_42 : f32 to vector<2x96xf32>
      %59 = arith.mulf %58, %57 : vector<2x96xf32>
      %60 = math.tanh %59 : vector<2x96xf32>
      %cst_43 = arith.constant 5.000000e-01 : f32
      %61 = vector.broadcast %cst_43 : f32 to vector<2x96xf32>
      %62 = arith.mulf %61, %60 : vector<2x96xf32>
      %cst_44 = arith.constant 5.000000e-01 : f32
      %63 = vector.broadcast %cst_44 : f32 to vector<2x96xf32>
      %64 = arith.addf %62, %63 : vector<2x96xf32>
      %65 = vector.extract_strided_slice %38 {offsets = [0, 96], sizes = [2, 32], strides = [1, 1]} : vector<2x128xf32> to vector<2x32xf32>
      %66 = math.tanh %65 : vector<2x32xf32>
      %67 = vector.extract_strided_slice %64 {offsets = [0, 32], sizes = [2, 32], strides = [1, 1]} : vector<2x96xf32> to vector<2x32xf32>
      %68 = arith.mulf %67, %arg24 : vector<2x32xf32>
      %69 = vector.extract_strided_slice %64 {offsets = [0, 0], sizes = [2, 32], strides = [1, 1]} : vector<2x96xf32> to vector<2x32xf32>
      %70 = arith.mulf %69, %66 : vector<2x32xf32>
      %71 = arith.addf %68, %70 : vector<2x32xf32>
      %72 = vector.extract_strided_slice %64 {offsets = [0, 64], sizes = [2, 32], strides = [1, 1]} : vector<2x96xf32> to vector<2x32xf32>
      %73 = math.tanh %71 : vector<2x32xf32>
      %74 = arith.mulf %72, %73 : vector<2x32xf32>
      scf.yield %56, %53, %74, %71 : vector<2x32xf32>, vector<2x32xf32>, vector<2x32xf32>, vector<2x32xf32>
    }
    %c4_i32_21 = arith.constant 4 : i32
    %c0_22 = arith.constant 0 : index
    %c0_23 = arith.constant 0 : index
    %15 = vector.load %arg16[%c0_22, %c0_23] : memref<2x32xf32, #tpu.memory_space<vmem>>, vector<2x32xf32>
    tpu.vector_store %arg16[%c0_22, %c0_23], %14#0 {strides = array<i32>} : memref<2x32xf32, #tpu.memory_space<vmem>>, vector<2x32xf32>,
    %c0_24 = arith.constant 0 : index
    %c0_25 = arith.constant 0 : index
    %16 = vector.load %arg17[%c0_24, %c0_25] : memref<2x32xf32, #tpu.memory_space<vmem>>, vector<2x32xf32>
    tpu.vector_store %arg17[%c0_24, %c0_25], %14#1 {strides = array<i32>} : memref<2x32xf32, #tpu.memory_space<vmem>>, vector<2x32xf32>,
    %c0_26 = arith.constant 0 : index
    %c0_27 = arith.constant 0 : index
    %17 = vector.load %arg18[%c0_26, %c0_27] : memref<2x32xf32, #tpu.memory_space<vmem>>, vector<2x32xf32>
    tpu.vector_store %arg18[%c0_26, %c0_27], %14#2 {strides = array<i32>} : memref<2x32xf32, #tpu.memory_space<vmem>>, vector<2x32xf32>,
    %c0_28 = arith.constant 0 : index
    %c0_29 = arith.constant 0 : index
    %18 = vector.load %arg19[%c0_28, %c0_29] : memref<2x32xf32, #tpu.memory_space<vmem>>, vector<2x32xf32>
    tpu.vector_store %arg19[%c0_28, %c0_29], %14#3 {strides = array<i32>} : memref<2x32xf32, #tpu.memory_space<vmem>>, vector<2x32xf32>,
    %c1_i32_30 = arith.constant 1 : i32
    %19 = arith.cmpi eq, %arg1, %c1_i32_30 : i32
    %20 = arith.extui %19 : i1 to i32
    %c0_i32_31 = arith.constant 0 : i32
    %21 = arith.cmpi ne, %20, %c0_i32_31 : i32
    scf.if %21 {
      %c0_32 = arith.constant 0 : index
      %c0_33 = arith.constant 0 : index
      %22 = vector.load %arg16[%c0_32, %c0_33] : memref<2x32xf32, #tpu.memory_space<vmem>>, vector<2x32xf32>
      %23 = math.tanh %22 : vector<2x32xf32>
      %c0_34 = arith.constant 0 : index
      %c0_35 = arith.constant 0 : index
      %24 = vector.load %arg18[%c0_34, %c0_35] : memref<2x32xf32, #tpu.memory_space<vmem>>, vector<2x32xf32>
      %25 = math.tanh %24 : vector<2x32xf32>
      %c0_36 = arith.constant 0 : index
      %c0_37 = arith.constant 0 : index
      %26 = vector.load %arg10[%c0_36, %c0_37] : memref<32x32xf32, #tpu.memory_space<vmem>>, vector<32x32xf32>
      %cst = arith.constant dense<0.000000e+00> : vector<2x32xf32>
      %27 = tpu.matmul %23, %26, %cst {dimension_numbers = #tpu.dot_dimension_numbers<[1], [0], [0], [1], [0, 0, 1, 1], [], []>} : vector<2x32xf32>, vector<32x32xf32>, vector<2x32xf32> -> vector<2x32xf32>
      %c0_38 = arith.constant 0 : index
      %c0_39 = arith.constant 0 : index
      %28 = vector.load %arg11[%c0_38, %c0_39] : memref<32x32xf32, #tpu.memory_space<vmem>>, vector<32x32xf32>
      %cst_40 = arith.constant dense<0.000000e+00> : vector<2x32xf32>
      %29 = tpu.matmul %25, %28, %cst_40 {dimension_numbers = #tpu.dot_dimension_numbers<[1], [0], [0], [1], [0, 0, 1, 1], [], []>} : vector<2x32xf32>, vector<32x32xf32>, vector<2x32xf32> -> vector<2x32xf32>
      %30 = arith.addf %27, %29 : vector<2x32xf32>
      %c0_41 = arith.constant 0 : index
      %c0_42 = arith.constant 0 : index
      %31 = vector.load %arg12[%c0_41, %c0_42] : memref<1x32xf32, #tpu.memory_space<vmem>>, vector<1x32xf32>
      %32 = vector.broadcast %31 : vector<1x32xf32> to vector<2x32xf32>
      %33 = arith.addf %30, %32 : vector<2x32xf32>
      %c0_43 = arith.constant 0 : index
      %c0_44 = arith.constant 0 : index
      %34 = vector.load %arg13[%c0_43, %c0_44] : memref<32x4xf32, #tpu.memory_space<vmem>>, vector<32x4xf32>
      %cst_45 = arith.constant dense<0.000000e+00> : vector<2x4xf32>
      %35 = tpu.matmul %33, %34, %cst_45 {dimension_numbers = #tpu.dot_dimension_numbers<[1], [0], [0], [1], [0, 0, 1, 1], [], []>} : vector<2x32xf32>, vector<32x4xf32>, vector<2x4xf32> -> vector<2x4xf32>
      %c0_46 = arith.constant 0 : index
      %c0_47 = arith.constant 0 : index
      %36 = vector.load %arg14[%c0_46, %c0_47] : memref<1x4xf32, #tpu.memory_space<vmem>>, vector<1x4xf32>
      %37 = vector.broadcast %36 : vector<1x4xf32> to vector<2x4xf32>
      %38 = arith.addf %35, %37 : vector<2x4xf32>
      %c0_48 = arith.constant 0 : index
      %c0_49 = arith.constant 0 : index
      %39 = vector.load %arg15[%c0_48, %c0_49] : memref<2x4xf32, #tpu.memory_space<vmem>>, vector<2x4xf32>
      tpu.vector_store %arg15[%c0_48, %c0_49], %38 {strides = array<i32>} : memref<2x4xf32, #tpu.memory_space<vmem>>, vector<2x4xf32>,
    } else {
    }
    return
  }
  func.func @transform_0(%arg0: i32, %arg1: i32) -> (i32, i32, i32) {
    %c0_i32 = arith.constant 0 : i32
    %c0_i32_0 = arith.constant 0 : i32
    return %arg1, %arg0, %c0_i32 : i32, i32, i32
  }
  func.func @transform_1(%arg0: i32, %arg1: i32) -> (i32, i32, i32) {
    %c1_i32 = arith.constant 1 : i32
    %0 = arith.subi %c1_i32, %arg1 : i32
    %c0_i32 = arith.constant 0 : i32
    %c0_i32_0 = arith.constant 0 : i32
    return %0, %arg0, %c0_i32 : i32, i32, i32
  }
  func.func @transform_2(%arg0: i32, %arg1: i32) -> (i32, i32) {
    %c0_i32 = arith.constant 0 : i32
    %c0_i32_0 = arith.constant 0 : i32
    %c0_i32_1 = arith.constant 0 : i32
    return %c0_i32, %c0_i32_0 : i32, i32
  }
  func.func @transform_3(%arg0: i32, %arg1: i32) -> (i32, i32) {
    %c0_i32 = arith.constant 0 : i32
    %c0_i32_0 = arith.constant 0 : i32
    %c0_i32_1 = arith.constant 0 : i32
    return %c0_i32, %c0_i32_0 : i32, i32
  }
  func.func @transform_4(%arg0: i32, %arg1: i32) -> (i32, i32) {
    %c0_i32 = arith.constant 0 : i32
    %c0_i32_0 = arith.constant 0 : i32
    %c0_i32_1 = arith.constant 0 : i32
    return %c0_i32, %c0_i32_0 : i32, i32
  }
  func.func @transform_5(%arg0: i32, %arg1: i32) -> (i32, i32) {
    %c0_i32 = arith.constant 0 : i32
    %c0_i32_0 = arith.constant 0 : i32
    %c0_i32_1 = arith.constant 0 : i32
    return %c0_i32, %c0_i32_0 : i32, i32
  }
  func.func @transform_6(%arg0: i32, %arg1: i32) -> (i32, i32) {
    %c0_i32 = arith.constant 0 : i32
    %c0_i32_0 = arith.constant 0 : i32
    %c0_i32_1 = arith.constant 0 : i32
    return %c0_i32, %c0_i32_0 : i32, i32
  }
  func.func @transform_7(%arg0: i32, %arg1: i32) -> (i32, i32) {
    %c0_i32 = arith.constant 0 : i32
    %c0_i32_0 = arith.constant 0 : i32
    %c0_i32_1 = arith.constant 0 : i32
    return %c0_i32, %c0_i32_0 : i32, i32
  }
  func.func @transform_8(%arg0: i32, %arg1: i32) -> (i32, i32) {
    %c0_i32 = arith.constant 0 : i32
    %c0_i32_0 = arith.constant 0 : i32
    %c0_i32_1 = arith.constant 0 : i32
    return %c0_i32, %c0_i32_0 : i32, i32
  }
  func.func @transform_9(%arg0: i32, %arg1: i32) -> (i32, i32) {
    %c0_i32 = arith.constant 0 : i32
    %c0_i32_0 = arith.constant 0 : i32
    %c0_i32_1 = arith.constant 0 : i32
    return %c0_i32, %c0_i32_0 : i32, i32
  }
  func.func @transform_10(%arg0: i32, %arg1: i32) -> (i32, i32) {
    %c0_i32 = arith.constant 0 : i32
    %c0_i32_0 = arith.constant 0 : i32
    %c0_i32_1 = arith.constant 0 : i32
    return %c0_i32, %c0_i32_0 : i32, i32
  }
  func.func @transform_11(%arg0: i32, %arg1: i32) -> (i32, i32) {
    %c0_i32 = arith.constant 0 : i32
    %c0_i32_0 = arith.constant 0 : i32
    %c0_i32_1 = arith.constant 0 : i32
    return %c0_i32, %c0_i32_0 : i32, i32
  }
  func.func @transform_12(%arg0: i32, %arg1: i32) -> (i32, i32) {
    %c0_i32 = arith.constant 0 : i32
    %c0_i32_0 = arith.constant 0 : i32
    %c0_i32_1 = arith.constant 0 : i32
    return %c0_i32, %c0_i32_0 : i32, i32
  }
  func.func @transform_13(%arg0: i32, %arg1: i32) -> (i32, i32) {
    %c0_i32 = arith.constant 0 : i32
    %c0_i32_0 = arith.constant 0 : i32
    return %arg0, %c0_i32 : i32, i32
  }
}

</mosaic_0001>

<bundles_post_ra>
// kernel: tpu_custom_call.1
= control target key start
LH: loop header
LB: loop body
LE: loop exit
PB: predicated region body
PF: predicated region fallthrough
CT: control target
= control target key end

     0   :  { %s2790_s0 = inlined_call_operand.hbm [shape: f32[8,2,32], index: 0, kind: input, shape index: {}]   ;;  %s2791_s1 = inlined_call_operand.hbm [shape: f32[8,2,32], index: 1, kind: input, shape index: {}]   ;;  %s2792_s2 = inlined_call_operand.vmem [shape: f32[32,128], index: 2, kind: input, shape index: {}]   ;;  %s2793_s3 = inlined_call_operand.hbm [shape: f32[32,128], index: 3, kind: input, shape index: {}]   ;;  %s2794_s4 = inlined_call_operand.hbm [shape: f32[32,128], index: 4, kind: input, shape index: {}]   ;;  %s2795_s5 = inlined_call_operand.hbm [shape: f32[32,128], index: 5, kind: input, shape index: {}]   ;;  %s2796_s6 = inlined_call_operand.vmem [shape: f32[1,128], index: 6, kind: input, shape index: {}]   ;;  %s2797_s7 = inlined_call_operand.vmem [shape: f32[1,128], index: 7, kind: input, shape index: {}]   ;;  %s2798_s8 = inlined_call_operand.vmem [shape: f32[32,32], index: 8, kind: input, shape index: {}]   ;;  %s2799_s9 = inlined_call_operand.hbm [shape: f32[32,32], index: 9, kind: input, shape index: {}]   ;;  %s2800_s10 = inlined_call_operand.vmem [shape: f32[1,32], index: 10, kind: input, shape index: {}]   ;;  %s2801_s11 = inlined_call_operand.vmem [shape: f32[32,4], index: 11, kind: input, shape index: {}]   ;;  %s2802_s12 = inlined_call_operand.vmem [shape: f32[1,4], index: 12, kind: input, shape index: {}]   ;;  %s2803_s13 = inlined_call_operand.hbm [shape: f32[2,4], index: 13, kind: output, shape index: {}]  }
   0x1   :  { %2815 = sst [smem:[#allocation26_spill]] %s2790_s0 }
   0x2   :  { %2816 = sst [smem:[#allocation27_spill]] %s2792_s2 }
   0x3   :  { %2817 = sst [smem:[#allocation28_spill]] %s2793_s3 }
   0x4   :  { %2818 = sst [smem:[#allocation29_spill]] %s2794_s4 }
   0x5   :  { %2819 = sst [smem:[#allocation30_spill]] %s2796_s6 }
   0x6   :  { %2820 = sst [smem:[#allocation31_spill]] %s2797_s7 }
   0x7   :  { %2821 = sst [smem:[#allocation32_spill]] %s2798_s8 }
   0x8   :  { %2822 = sst [smem:[#allocation33_spill]] %s2800_s10 }
   0x9   :  { %2823 = sst [smem:[#allocation34_spill]] %s2801_s11 }
   0xa   :  { %2824 = sst [smem:[#allocation35_spill]] %s2802_s12 }
   0xb   :  { %2825 = sst [smem:[#allocation36_spill]] %s2803_s13 }
   0xc   :  { %18 = vsyncpa [#allocation7], 0 }
   0xd   :  { %20 = vsyncpa [#allocation7 + $0x1], 0 }
   0xe   :  { %21 = vsyncpa [#allocation10], 0 }
   0xf   :  { %23 = vsyncpa [#allocation10 + $0x1], 0 }
  0x10   :  { %24 = vsyncpa [#allocation13], 0 }
  0x11   :  { %25 = vsyncpa [#allocation16], 0 }
  0x12   :  { %26 = vsyncpa [#allocation8], 0  ;;  %s2243_s25 = smov 0   ;;  %s2245_s26 = smov 0  }
  0x13   :  { %s2247_s27 = smov 0   ;;  %s2249_s28 = smov 0  }
  0x14   :  { %s2251_s29 = smov 0   ;;  %s2253_s30 = smov 0  }
  0x15   :  { %s2255_s14 = smov 0   ;;  %s2257_s15 = smov 0  }
  0x16   :  { %s2259_s16 = smov 0  }
  0x17 LB: > { %2826 = sst [smem:[#allocation24_spill]] %s2122_s14  ;;  %s2287_s17 = sadd.s32 4294967295, %s2130_s16   ;;  %s2130_s16 = sphi %s2259_s16, %s32_s16   ;;  %s2126_s15 = sphi %s2257_s15, %s2874_s15   ;;  %s2122_s14 = sphi %s2255_s14, %s2873_s14   ;;  %s2118_s30 = sphi %s2253_s30, %s2872_s30   ;;  %s2114_s29 = sphi %s2251_s29, %s2871_s29   ;;  %s2110_s28 = sphi %s2249_s28, %s2870_s28   ;;  %s2106_s27 = sphi %s2247_s27, %s2869_s27   ;;  %s2102_s26 = sphi %s2245_s26, %s2868_s26   ;;  %s2098_s25 = sphi %s2243_s25, %s2867_s25  }
  0x18   : > { %p96_p0 = scmp.ne.s32.totalorder %s2102_s26, %s2098_s25  ;;  %p2808_p1 = scmp.eq.s32.totalorder %s2287_s17, 0 }
  0x19   : > { %p1416_p2 = scmp.ge.s32.totalorder %s2130_s16, 1  ;;  %p364_p3 = scmp.lt.s32.totalorder %s2130_s16, 3 }
  0x1a   : > { %p2295_p4 = por %p96_p0, %p2808_p1  ;;  %s2152_s20 = smov [#allocation11]  }
  0x1b   : > { %p2299_p5 = pnand %p1416_p2, %p364_p3  ;;  %s379_s21 = sshll.u32 %s2152_s20, 4  ;;  %s2303_s21 = int_to_ptr.vmem [resolvable:$true] %s379_s21 }
  0x1c   : > { %s2827_s18 = scalar_select %p2295_p4, 1, 0 }
  0x1d   : > { %s2829_s19 = scalar_select %p2299_p5, 1, 0 }
  0x1e   : > { %2828 = sst [smem:[#allocation25_spill]] %s2827_s18  ;;  %p1640_p6 = pneg %p2299_p5 }
  0x1f   : > { %s2153_s23 = smov [#allocation12]   ;;  %s2154_s25 = smov [#allocation14]  }
  0x20   : > { %p2309_p7 = pnand %p1640_p6, %p2808_p1  ;;  %s392_s24 = sshll.u32 %s2153_s23, 4  ;;  %s2313_s24 = int_to_ptr.vmem [resolvable:$true] %s392_s24 }
  0x21   : > { %s2315_s13 = sshll.u32 %s2154_s25, 4  ;;  %s2831_s3 = sld [smem:[#allocation28_spill]]  ;;  %s406_s13 = int_to_ptr.vmem [resolvable:$true] %s2315_s13 }
  0x22   : > { %p2325_p9 = pneg %p2309_p7 }
  0x27   : > { %s1818_s20 = scalar_lea.hbm %s2831_s3, 512 }
  0x28   : > { %p1819_p8 = scmp.ne.s32.totalorder %s2831_s3, %s1818_s20  ;;  %p1825_p12 = scmp.lt.u32.totalorder %s1818_s20, %s2831_s3 }
  0x2a   : > { %p1821_p10 = pnand %p2325_p9, %p1819_p8 }
  0x2c   : > { %p1822_p11 = pneg %p1821_p10 }
  0x2e   : > { %p1827_p13 = pnand %p1825_p12, %p1822_p11 }
  0x30   : > { %1830 = shalt.err (!%p1827_p13)
}
  0x31   : > { %s1831_s8 = scalar_lea.vmem %s2303_s21, 512  ;;  %p1839_p6 = scmp.lt.s32.totalorder %s2303_s21, %s2303_s21 }
  0x32   : > { %p1832_p0 = scmp.ne.s32.totalorder %s2303_s21, %s1831_s8  ;;  %p1840_p1 = scmp.lt.s32.totalorder %s1831_s8, %s1831_s8 }
  0x34   : > { %p1834_p2 = pnand %p1832_p0, %p2325_p9  ;;  %p1841_p8 = por %p1840_p1, %p1839_p6 }
  0x36   : > { %p1835_p3 = pneg %p1834_p2 }
  0x38   : > { %p1842_p10 = pnand %p1841_p8, %p1835_p3 }
  0x3a   : > { %1845 = shalt.err (!%p1842_p10)
}
  0x3b   : > { %s2155_s10 = smov 128   ;;  %s2156_s11 = smov 8  }
  0x3c   : > { %1643 = dma.hbm_to_vmem [thread:$0]  (!%p2309_p7), %s2831_s3, 512, %s2303_s21, [#allocation10], %s2155_s10, %s2155_s10, %s2156_s11  }
  0x3d   : > { %s2833_s4 = sld [smem:[#allocation29_spill]] }
  0x43   : > { %s1846_s8 = scalar_lea.hbm %s2833_s4, 512 }
  0x44   : > { %p1847_p1 = scmp.ne.s32.totalorder %s2833_s4, %s1846_s8  ;;  %p1853_p13 = scmp.lt.u32.totalorder %s1846_s8, %s2833_s4 }
  0x46   : > { %p1849_p11 = pnand %p1847_p1, %p2325_p9 }
  0x48   : > { %p1850_p12 = pneg %p1849_p11 }
  0x4a   : > { %p1855_p0 = pnand %p1853_p13, %p1850_p12 }
  0x4c   : > { %1858 = shalt.err (!%p1855_p0)
}
  0x4d   : > { %s1859_s21 = scalar_lea.vmem %s2313_s24, 512  ;;  %p1867_p8 = scmp.lt.s32.totalorder %s2313_s24, %s2313_s24 }
  0x4e   : > { %p1860_p2 = scmp.ne.s32.totalorder %s2313_s24, %s1859_s21  ;;  %p1868_p10 = scmp.lt.s32.totalorder %s1859_s21, %s1859_s21 }
  0x50   : > { %p1862_p3 = pnand %p1860_p2, %p2325_p9  ;;  %p1869_p1 = por %p1868_p10, %p1867_p8 }
  0x52   : > { %p1863_p6 = pneg %p1862_p3 }
  0x54   : > { %p1870_p11 = pnand %p1869_p1, %p1863_p6 }
  0x56   : > { %1873 = shalt.err (!%p1870_p11)
}
  0x57   : > { %1646 = dma.hbm_to_vmem [thread:$0]  (!%p2309_p7), %s2833_s4, 512, %s2313_s24, [#allocation13], %s2155_s10, %s2155_s10, %s2156_s11  }
  0x58   : > { %s1874_s12 = scalar_lea.hbm %s2795_s5, 512 }
  0x59   : > { %p1875_p12 = scmp.ne.s32.totalorder %s2795_s5, %s1874_s12  ;;  %p1881_p2 = scmp.lt.u32.totalorder %s1874_s12, %s2795_s5 }
  0x5b   : > { %p1877_p13 = pnand %p1875_p12, %p2325_p9 }
  0x5d   : > { %p1878_p0 = pneg %p1877_p13 }
  0x5f   : > { %p1883_p3 = pnand %p1881_p2, %p1878_p0 }
  0x61   : > { %1886 = shalt.err (!%p1883_p3)
}
  0x62   : > { %s1887_s21 = scalar_lea.vmem %s406_s13, 512  ;;  %p1895_p1 = scmp.lt.s32.totalorder %s406_s13, %s406_s13 }
  0x63   : > { %p1888_p6 = scmp.ne.s32.totalorder %s406_s13, %s1887_s21  ;;  %p1896_p11 = scmp.lt.s32.totalorder %s1887_s21, %s1887_s21 }
  0x65   : > { %p1890_p8 = pnand %p1888_p6, %p2325_p9  ;;  %p1897_p4 = por %p1896_p11, %p1895_p1 }
  0x67   : > { %p1891_p10 = pneg %p1890_p8 }
  0x69   : > { %p1898_p5 = pnand %p1897_p4, %p1891_p10 }
  0x6b   : > { %1901 = shalt.err (!%p1898_p5)
}
  0x6c   : > { %1649 = dma.hbm_to_vmem [thread:$0]  (!%p2309_p7), %s2795_s5, 512, %s406_s13, [#allocation13], %s2155_s10, %s2155_s10, %s2156_s11  }
  0x6d   : > { %s2157_s7 = smov [#allocation15]   ;;  %s1902_s20 = scalar_lea.hbm %s2799_s9, 512 }
  0x6e   : > { %s427_s14 = sshll.u32 %s2157_s7, 4  ;;  %p1903_p4 = scmp.ne.s32.totalorder %s2799_s9, %s1902_s20  ;;  %s428_s14 = int_to_ptr.vmem [resolvable:$true] %s427_s14 }
  0x6f   : > { %p1909_p13 = scmp.lt.u32.totalorder %s1902_s20, %s2799_s9 }
  0x70   : > { %p1905_p5 = pnand %p1903_p4, %p2325_p9 }
  0x72   : > { %p1906_p12 = pneg %p1905_p5 }
  0x74   : > { %p1911_p0 = pnand %p1909_p13, %p1906_p12 }
  0x76   : > { %1914 = shalt.err (!%p1911_p0)
}
  0x77   : > { %s1915_s13 = scalar_lea.vmem %s428_s14, 512  ;;  %p1923_p8 = scmp.lt.s32.totalorder %s428_s14, %s428_s14 }
  0x78   : > { %p1916_p2 = scmp.ne.s32.totalorder %s428_s14, %s1915_s13  ;;  %p1924_p10 = scmp.lt.s32.totalorder %s1915_s13, %s1915_s13 }
  0x7a   : > { %p1918_p3 = pnand %p1916_p2, %p2325_p9  ;;  %p1925_p1 = por %p1924_p10, %p1923_p8 }
  0x7c   : > { %p1919_p6 = pneg %p1918_p3 }
  0x7e   : > { %p1926_p11 = pnand %p1925_p1, %p1919_p6 }
  0x80   : > { %1929 = shalt.err (!%p1926_p11)
}
  0x81   : > { %1652 = dma.hbm_to_vmem [thread:$0]  (!%p2309_p7), %s2799_s9, 512, %s428_s14, [#allocation16], %s2155_s10, %s2155_s10, %s2156_s11  }
  0x82   : > { %s41_s2 = sadd.s32 1, %s2126_s15  ;;  %s53_s22 = sadd.s32 1, %s2118_s30 }
  0x83   : > { %p42_p9 = scmp.ge.s32.totalorder %s41_s2, 2  ;;  %p60_p4 = scmp.ne.s32.totalorder %s2118_s30, %s2114_s29 }
  0x84   : > { %p2814_p5 = scmp.eq.s32.totalorder %s2130_s16, 0  ;;  %p66_p12 = scmp.ne.s32.totalorder %s2114_s29, %s2110_s28 }
  0x85   : > { %s2876_s2 = smov (%p42_p9, %s41_s2), 0  ;;  %p2835_p0 = scmp.eq.s32.totalorder %s2287_s17, 0 }
  0x86   : > { %p2429_p13 = por %p2814_p5, %p60_p4  ;;  %s48_s11 = ssub.s32 %s2126_s15, %s2876_s2 }
  0x87   : > { %p2435_p2 = por %p2835_p0, %p66_p12  ;;  %p2813_p7 = scmp.lt.s32.totalorder %s2130_s16, 2 }
  0x88   : > { %p51_p3 = scmp.eq.s32.totalorder %s48_s11, 0  ;;  %s450_s14 = sand.u32 1, %s2118_s30  }
  0x89   : > { %s1422_s18 = sshll.u32 %s450_s14, 3  ;;  %s1454_s12 = sshll.u32 %s2126_s15, 7 }
  0x8a   : > { %s2444_s28 = scalar_select %p51_p3, %s2118_s30, %s53_s22  }
  0x8b   : > { %s2837_s0 = sld [smem:[#allocation26_spill]]  ;;  %s454_s8 = scalar_lea.vmem [#allocation6], %s1422_s18 }
  0x8c   : > { %s462_s21 = sshll.u32 %s454_s8, 4  ;;  %p2458_p6 = pnand %p2813_p7, %p2429_p13  ;;  %s2452_s21 = int_to_ptr.vmem [resolvable:$true] %s462_s21 }
  0x8d   : > { %s2462_s24 = scalar_lea.sflag [#allocation7], %s450_s14 }
  0x8e   : > { %p1932_p10 = pneg %p2458_p6 }
  0x91   : > { %s2450_s25 = scalar_lea.hbm %s2837_s0, %s1454_s12  ;;  %s1935_s7 = scalar_lea.hbm %s2837_s0, 256 }
  0x92   : > { %s1930_s6 = scalar_lea.hbm %s2450_s25, 128  ;;  %p1936_p9 = scmp.lt.u32.totalorder %s2450_s25, %s2837_s0 }
  0x93   : > { %p1931_p8 = scmp.ne.s32.totalorder %s2450_s25, %s1930_s6  ;;  %p1937_p4 = scmp.lt.u32.totalorder %s1935_s7, %s1930_s6 }
  0x94   : > { %p1939_p13 = scmp.lt.u32.totalorder %s1930_s6, %s2450_s25 }
  0x95   : > { %p1933_p1 = pnand %p1932_p10, %p1931_p8  ;;  %p1938_p12 = por %p1937_p4, %p1936_p9 }
  0x97   : > { %p1934_p11 = pneg %p1933_p1  ;;  %p1940_p0 = por %p1939_p13, %p1938_p12 }
  0x99   : > { %p1941_p3 = pnand %p1940_p0, %p1934_p11 }
  0x9b   : > { %1944 = shalt.err (!%p1941_p3)
}
  0x9c   : > { %s1945_s14 = scalar_lea.vmem %s2452_s21, 128  ;;  %s2158_s20 = smov [#allocation6]  }
  0x9d   : > { %p1946_p8 = scmp.ne.s32.totalorder %s2452_s21, %s1945_s14  ;;  %s1950_s23 = sshll.u32 %s2158_s20, 4  ;;  %s1951_s23 = int_to_ptr.vmem [resolvable:$false] %s1950_s23 }
  0x9e   : > { %s1952_s8 = scalar_lea.vmem %s1951_s23, 256  ;;  %p1953_p5 = scmp.lt.s32.totalorder %s2452_s21, %s1951_s23 }
  0x9f   : > { %p1948_p1 = pnand %p1946_p8, %p1932_p10  ;;  %p1954_p9 = scmp.lt.s32.totalorder %s1952_s8, %s1945_s14 }
  0xa1   : > { %p1949_p7 = pneg %p1948_p1  ;;  %p1955_p4 = por %p1954_p9, %p1953_p5 }
  0xa3   : > { %p1956_p12 = pnand %p1955_p4, %p1949_p7 }
  0xa5   : > { %1959 = shalt.err (!%p1956_p12)
}
  0xa6   : > { %s2159_s6 = smov 32   ;;  %s2160_s22 = smov 2  }
  0xa7   : > { %1656 = dma.hbm_to_vmem [thread:$0]  (!%p2458_p6), %s2450_s25, 128, %s2452_s21, %s2462_s24, %s2159_s6, %s2159_s6, %s2160_s22  }
  0xa8   : > { %s76_s11 = ssub.s32 1, %s2126_s15  ;;  %s77_s7 = ssub.s32 1, %s2876_s2 }
  0xa9   : > { %s83_s18 = sadd.s32 1, %s2106_s27  ;;  %s78_s12 = ssub.s32 %s76_s11, %s77_s7 }
  0xaa   : > { %p90_p5 = scmp.ne.s32.totalorder %s2106_s27, %s2102_s26  ;;  %p81_p7 = scmp.eq.s32.totalorder %s78_s12, 0 }
  0xab   : > { %s472_s14 = sand.u32 1, %s2130_s16   ;;  %p2839_p10 = scmp.eq.s32.totalorder %s2130_s16, 0 }
  0xac   : > { %s2502_s20 = scalar_select %p81_p7, %s2106_s27, %s83_s18  }
  0xad   : > { %p92_p11 = por %p90_p5, %p2839_p10  ;;  %s474_s23 = sand.u32 1, %s2106_s27  }
  0xae   : > { %s1455_s8 = sshll.u32 %s76_s11, 7  ;;  %s1425_s0 = sshll.u32 %s474_s23, 3 }
  0xaf   : > { %s2508_s4 = scalar_lea.hbm %s2791_s1, %s1455_s8  ;;  %p2840_p6 = scmp.lt.s32.totalorder %s2130_s16, 2 }
  0xb0   : > { %s476_s21 = scalar_lea.vmem [#allocation9], %s1425_s0  ;;  %s2518_s11 = scalar_lea.sflag [#allocation10], %s472_s14 }
  0xb1   : > { %p2512_p13 = pnand %p2840_p6, %p92_p11  ;;  %s485_s24 = sshll.u32 %s476_s21, 4  ;;  %s2516_s24 = int_to_ptr.vmem [resolvable:$true] %s485_s24 }
  0xb2   : > { %s1960_s3 = scalar_lea.hbm %s2508_s4, 128  ;;  %s1965_s12 = scalar_lea.hbm %s2791_s1, 256 }
  0xb3   : > { %p1961_p0 = scmp.ne.s32.totalorder %s2508_s4, %s1960_s3  ;;  %p1962_p3 = pneg %p2512_p13 }
  0xb4   : > { %p1966_p9 = scmp.lt.u32.totalorder %s2508_s4, %s2791_s1  ;;  %p1967_p4 = scmp.lt.u32.totalorder %s1965_s12, %s1960_s3 }
  0xb5   : > { %p1963_p8 = pnand %p1962_p3, %p1961_p0  ;;  %p1969_p5 = scmp.lt.u32.totalorder %s1960_s3, %s2508_s4 }
  0xb6   : > { %p1968_p12 = por %p1967_p4, %p1966_p9 }
  0xb7   : > { %p1964_p1 = pneg %p1963_p8 }
  0xb8   : > { %p1970_p7 = por %p1969_p5, %p1968_p12 }
  0xba   : > { %p1971_p10 = pnand %p1970_p7, %p1964_p1 }
  0xbc   : > { %1974 = shalt.err (!%p1971_p10)
}
  0xbd   : > { %s1975_s0 = scalar_lea.vmem %s2516_s24, 128  ;;  %s2161_s14 = smov [#allocation9]  }
  0xbe   : > { %p1976_p11 = scmp.ne.s32.totalorder %s2516_s24, %s1975_s0  ;;  %s1980_s13 = sshll.u32 %s2161_s14, 4  ;;  %s1981_s13 = int_to_ptr.vmem [resolvable:$false] %s1980_s13 }
  0xbf   : > { %s1982_s21 = scalar_lea.vmem %s1981_s13, 256  ;;  %p1983_p8 = scmp.lt.s32.totalorder %s2516_s24, %s1981_s13 }
  0xc0   : > { %p1978_p6 = pnand %p1976_p11, %p1962_p3  ;;  %p1984_p9 = scmp.lt.s32.totalorder %s1982_s21, %s1975_s0 }
  0xc2   : > { %p1979_p0 = pneg %p1978_p6  ;;  %p1985_p4 = por %p1984_p9, %p1983_p8 }
  0xc4   : > { %p1986_p12 = pnand %p1985_p4, %p1979_p0 }
  0xc6   : > { %1989 = shalt.err (!%p1986_p12)
}
  0xc7   : > { %1659 = dma.hbm_to_vmem [thread:$0]  (!%p2512_p13), %s2508_s4, 128, %s2516_s24, %s2518_s11, %s2159_s6, %s2159_s6, %s2160_s22  }
  0xc8   : > { %p2842_p3 = scmp.ne.s32.totalorder %s2829_s19, 0 }
  0xc9   : > { %s499_s3 = sand.u32 (!%p2842_p3), 1, %s2114_s29  }
  0xca   : > { %497 = sbr.rel (%p2842_p3) target bundleno = 1458 (0x5b2), region = 72  ;;  %s2552_s7 = sshll.u32 (!%p2842_p3), %s499_s3, 3 }
  0xcb   : > { %s500_s18 = scalar_lea.sflag (!%p2842_p3), [#allocation7], %s499_s3  ;;  %s503_s12 = scalar_lea.vmem (!%p2842_p3), [#allocation6], %s2552_s7 }
  0xd1   : > { %2073 = dma.done.wait (%p2435_p2), %s500_s18, 128  }
  0xd2   : > { %2075 = vsyncadd (%p2435_p2), %s500_s18, 4294967168  ;;  %s2843_s25 = sld [smem:[#allocation25_spill]]  ;;  %s508_s4 = sand.u32 1, %s2287_s17  }
  0xd3   : > { %s510_s6 = sand.u32 1, %s2102_s26   ;;  %s509_s22 = scalar_lea.sflag [#allocation10], %s508_s4 }
  0xd4   : > { %s2561_s19 = sshll.u32 %s510_s6, 3 }
  0xd5   : > { %s512_s24 = scalar_lea.vmem [#allocation9], %s2561_s19 }
  0xd8   : > { %p2844_p13 = scmp.ne.s32.totalorder %s2843_s25, 0 }
  0xda   : > { %2077 = dma.done.wait (%p2844_p13), %s509_s22, 128  }
  0xdb   : > { %2079 = vsyncadd (%p2844_p13), %s509_s22, 4294967168  ;;  %p2845_p1 = scmp.eq.s32.totalorder %s2287_s17, 0 }
  0xdd   : > { %2081 = dma.done.wait (%p2845_p1), [#allocation10], 512   ;;  %p2846_p2 = pmov %p2845_p1 }
  0xde   : > { %p2847_p5 = pmov %p2845_p1 }
  0xdf   : > { %2083 = vsyncadd (%p2846_p2), [#allocation10], 4294966784 }
  0xe0   : > { %2085 = dma.done.wait (%p2847_p5), [#allocation13], 1024   ;;  %p2848_p7 = pmov %p2845_p1 }
  0xe1   : > { %p2849_p10 = pmov %p2845_p1 }
  0xe2   : > { %2087 = vsyncadd (%p2848_p7), [#allocation13], 4294966272 }
  0xe3   : > { %2089 = dma.done.wait (%p2849_p10), [#allocation16], 512   ;;  %p2850_p11 = pmov %p2845_p1 }
  0xe4   : > { %s2851_s10 = sld [smem:[#allocation24_spill]] }
  0xe5   : > { %2091 = vsyncadd (%p2850_p11), [#allocation16], 4294966784 }
  0xea   : > { %p1435_p6 = scmp.ne.s32.totalorder %s2851_s10, 0 }
  0xeb   : > { %vm578_vm0 = vcmask (!%p1435_p6), 254976   ;;  %v2162_v0 = vmov (!%p1435_p6), 0.0  }
  0xec   : > { %577 = sbr.rel (%p1435_p6) target bundleno = 243 (0xf3), region = 100  ;;  %579 = vst.msk [vmem:[#allocation2] sm:$0x3] (!%p1435_p6), %vm578_vm0, %v2162_v0  ;;  %580 = vst.msk [vmem:[#allocation3] sm:$0x3] (!%p1435_p6), %vm578_vm0, %v2162_v0 }
  0xed   : > { %581 = vst.msk [vmem:[#allocation4] sm:$0x3] (!%p1435_p6), %vm578_vm0, %v2162_v0  ;;  %582 = vst.msk [vmem:[#allocation5] sm:$0x3] (!%p1435_p6), %vm578_vm0, %v2162_v0 }
  0xf3 PF: > { %v2581_v1 = vld [vmem:[#allocation12] sm:$0xff]  ;;  %v2583_v2 = vld [vmem:[#allocation12 + $0x8] sm:$0xff]  ;;  %v2585_v3 = vld [vmem:[#allocation12 + $0x10] sm:$0xff]  ;;  %s2852_s8 = sld [smem:[#allocation30_spill]]  ;;  %s2853_s13 = sld [smem:[#allocation31_spill]] }
  0xf4   : > { %v2587_v4 = vld [vmem:[#allocation12 + $0x18] sm:$0xff]  ;;  %v2589_v5 = vld [vmem:[#allocation14] sm:$0xff]  ;;  %v2591_v6 = vld [vmem:[#allocation14 + $0x8] sm:$0xff]  ;;  %s2854_s18 = sld [smem:[#allocation27_spill]]  ;;  %s2643_s23 = smov 0  }
  0xf5   : > { %v2593_v7 = vld [vmem:[#allocation14 + $0x10] sm:$0xff]  ;;  %v2595_v8 = vld [vmem:[#allocation14 + $0x18] sm:$0xff]  ;;  %v2627_v15 = vld [vmem:[#allocation11] sm:$0xff] }
  0xf6   : > { %v2629_v16 = vld [vmem:[#allocation11 + $0x8] sm:$0xff]  ;;  %v2631_v17 = vld [vmem:[#allocation11 + $0x10] sm:$0xff]  ;;  %v2633_v18 = vld [vmem:[#allocation11 + $0x18] sm:$0xff] }
  0xf7   : > { %v601_v19 = vld [vmem:[#allocation2] sm:$0x3]   ;;  %v602_v20 = vld [vmem:[#allocation3] sm:$0x3]   ;;  %v603_v21 = vld [vmem:[#allocation4] sm:$0x3]  }
  0xf8   : > { %v604_v22 = vld [vmem:[#allocation5] sm:$0x3]  }
  0xf9   : > { %v2600_v9 = vld [vmem:[%s2852_s8] ss:$0 sm:$0xff] }
  0xfa   : > { %v2605_v10 = vld [vmem:[%s2853_s13] ss:$0 sm:$0xff]  ;;  %v2615_v12 = vld [vmem:[%s2854_s18 + $0x8] sm:$0xff]  ;;  %v2620_v13 = vld [vmem:[%s2854_s18 + $0x10] sm:$0xff] }
  0xfb   : > { %v2610_v11 = vld [vmem:[%s2854_s18] sm:$0xff]  ;;  %v2625_v14 = vld [vmem:[%s2854_s18 + $0x18] sm:$0xff] }
  0xfc LB: >> { %v1569_v23 = vpack.c.bf16 %v2615_v12, %v2610_v11  ;;  %v1575_v24 = vpack.c.bf16 %v2629_v16, %v2627_v15  ;;  %v2163_v25 = vmov 0.0|0.0   ;;  %v1572_v26 = vpack.c.bf16 %v2625_v14, %v2620_v13  ;;  %s1436_s8 = sshll.u32 %s2150_s23, 1  ;;  %s698_s0 = ssub.s32 3, %s2150_s23  ;;  %s2150_s23 = sphi %s2643_s23, %s610_s23   ;;  %v2146_v19 = vphi %v601_v19, %v2858_v19   ;;  %v2142_v20 = vphi %v602_v20, %v2857_v20   ;;  %v2138_v21 = vphi %v603_v21, %v2856_v21   ;;  %v2134_v22 = vphi %v604_v22, %v2855_v22  }
  0xfd   : >> { %1568 = vmatprep.subr.bf16.mxu0 %v2163_v25  ;;  %1574 = vmatprep.subr.bf16.mxu1 %v2163_v25  ;;  %v1578_v27 = vpack.c.bf16 %v2633_v18, %v2631_v17  ;;  %s616_s14 = scalar_lea.vmem %s503_s12, %s1436_s8 [#allocation6]  ;;  %s1439_s13 = sshll.u32 %s698_s0, 1  ;;  %vm2164_vm1 = vmmov 0   ;;  %v2165_v28 = vmov 0.0   ;;  %vm624_vm2 = vcmask 261120  }
  0xfe   : >> { %1570 = vmatpush3.bf16.msra.mxu0 %v1569_v23  ;;  %1576 = vmatpush3.bf16.msra.mxu1 %v1575_v24  ;;  %s700_s21 = scalar_lea.vmem %s512_s24, %s1439_s13 [#allocation9]  ;;  %s2166_s3 = smov 32   ;;  %v617_v29 = vld [vmem:[%s616_s14] sm:$0x3]  ;;  %v1581_v31 = vpack.c.bf16 %v2583_v2, %v2581_v1  ;;  %v1587_v32 = vpack.c.bf16 %v2591_v6, %v2589_v5  ;;  %v1584_v33 = vpack.c.bf16 %v2587_v4, %v2585_v3 }
  0xff   : >> { %1571 = vmatprep.subr.bf16.mxu0 %v2163_v25  ;;  %1577 = vmatprep.subr.bf16.mxu1 %v2163_v25  ;;  %v701_v30 = vld [vmem:[%s700_s21] sm:$0x3]  ;;  %v1590_v34 = vpack.c.bf16 %v2595_v8, %v2593_v7  ;;  %s2167_s25 = smov 96   ;;  %s2168_s4 = smov 64  }
 0x100   : >> { %1499 = vmatprep.mubr.msk.f32.mxu0 %vm2164_vm1, %v2165_v28  ;;  %1510 = vmatprep.mubr.msk.f32.mxu1 %vm2164_vm1, %v2165_v28  ;;  %s610_s23 = sadd.s32 1, %s2150_s23  }
 0x101   : >> { %935 = vrot.lane.b32.xlu1 %v2142_v20, %s2166_s3  ;;  %p607_p0 = scmp.ge.s32.totalorder %s610_s23, 4  }
 0x102   : >> { %1573 = vmatpush3.bf16.msra.mxu0 %v1572_v26  ;;  %1579 = vmatpush3.bf16.msra.mxu1 %v1578_v27  ;;  %vm997_vm3 = vcmask (%p607_p0), 254976   ;;  %s2859_s6 = sld [smem:[#allocation24_spill]] (%p607_p0) }
 0x103   : >> { %1580 = vmatprep.subr.bf16.mxu0 %v2163_v25  ;;  %1586 = vmatprep.subr.bf16.mxu1 %v2163_v25 }
 0x105   : >> { %1500 = vmatmul.mubr.msk.f32.vlgmr.msra.gmra.mrb[0].mxu0 %vm624_vm2, %v617_v29  ;;  %1511 = vmatmul.mubr.msk.f32.vlgmr.msra.gmra.mrb[0].mxu1 %vm624_vm2, %v701_v30 }
 0x106   : >> { %1582 = vmatpush3.bf16.msra.mxu0 %v1581_v31  ;;  %1588 = vmatpush3.bf16.msra.mxu1 %v1587_v32 }
 0x107   : >> { %1583 = vmatprep.subr.bf16.mxu0 %v2163_v25  ;;  %1589 = vmatprep.subr.bf16.mxu1 %v2163_v25 }
 0x108   : >> { %1521 = vmatprep.mubr.msk.f32.mxu0 %vm2164_vm1, %v2165_v28  ;;  %1532 = vmatprep.mubr.msk.f32.mxu1 %vm2164_vm1, %v2165_v28  ;;  %p1444_p8 = scmp.ne.s32.totalorder (%p607_p0), %s2859_s6, 1 }
 0x109   : >> { %961 = vrot.lane.b32.xlu1 %v2134_v22, %s2166_s3 }
 0x10a   : >> { %1585 = vmatpush3.bf16.msra.mxu0 %v1584_v33  ;;  %1591 = vmatpush3.bf16.msra.mxu1 %v1590_v34 }
 0x10d   : >> { %1522 = vmatmul.mubr.msk.f32.vlgmr.msra.gmra.mrb[0].mxu0 %vm624_vm2, %v2146_v19  ;;  %1533 = vmatmul.mubr.msk.f32.vlgmr.msra.gmra.mrb[0].mxu1 %vm624_vm2, %v2138_v21 }
 0x173   : >> { %v936_v55 = vpop.permute.xlu1 %935 }
 0x17b   : >> { %v962_v57 = vpop.permute.xlu1 %961 }
 0x1e0   : >> { %v850_v35 = vpop.f32.mrb[0].mxu0  ;;  %v924_v36 = vpop.f32.mrb[0].mxu1 }
 0x1e1   : >> { %v1610_v37 = vadd.f32 %v2600_v9, %v850_v35  ;;  %v1523_v38 = vpop.f32.mrb[1].mxu0  ;;  %v1534_v39 = vpop.f32.mrb[1].mxu1  ;;  %v1611_v40 = vadd.f32 %v2605_v10, %v924_v36 }
 0x1e3   : >> { %1802 = vtanh.f32 %v1610_v37  ;;  %v929_v43 = vmul.f32 0.5, %v1610_v37  ;;  %v955_v44 = vmul.f32 0.5, %v1611_v40 }
 0x1e4   : >> { %1804 = vtanh.f32 %v1611_v40 }
 0x1e5   : >> { %1806 = vtanh.f32 %v929_v43 }
 0x1e6   : >> { %1808 = vtanh.f32 %v955_v44 }
 0x1ed   : >> { %v1803_v41 = vpop.eup %1802 }
 0x1ee   : >> { %940 = vrot.lane.b32.xlu0 %v1803_v41, %s2166_s3  ;;  %v1805_v42 = vpop.eup %1804 }
 0x1ef   : >> { %v1807_v45 = vpop.eup %1806 }
 0x1f0   : >> { %v931_v46 = vmul.f32 0.5, %v1807_v45  ;;  %v1809_v47 = vpop.eup %1808 }
 0x1f1   : >> { %v957_v49 = vmul.f32 0.5, %v1809_v47 }
 0x1f2   : >> { %966 = vrot.lane.b32.xlu0 %v1805_v42, %s2166_s3  ;;  %v932_v48 = vadd.f32 0.5, %v931_v46 }
 0x1f3   : >> { %v958_v52 = vadd.f32 0.5, %v957_v49 }
 0x1f4   : >> { %v938_v56 = vmul.f32 %v936_v55, %v932_v48 }
 0x1f5   : >> { %v964_v60 = vmul.f32 %v962_v57, %v958_v52 }
 0x260   : >> { %v941_v50 = vpop.permute.xlu0 %940 }
 0x261   : >> { %v943_v51 = vmul.f32 %v941_v50, %v932_v48 }
 0x263   : >> { %945 = vrot.lane.b32.xlu0 %v943_v51, %s2166_s3 }
 0x264   : >> { %v967_v53 = vpop.permute.xlu0 %966 }
 0x265   : >> { %v969_v54 = vmul.f32 %v967_v53, %v958_v52 }
 0x267   : >> { %971 = vrot.lane.b32.xlu1 %v969_v54, %s2166_s3 }
 0x2d5   : >> { %v946_v58 = vpop.permute.xlu0 %945 }
 0x2d6   : >> { %v948_v59 = vadd.f32 %v946_v58, %v938_v56 }
 0x2d8   : >> { %1810 = vtanh.f32 %v948_v59 }
 0x2d9   : >> { %v972_v61 = vpop.permute.xlu1 %971 }
 0x2da   : >> { %v974_v62 = vadd.f32 %v972_v61, %v964_v60 }
 0x2dc   : >> { %1812 = vtanh.f32 %v974_v62 }
 0x2e2   : >> { %v1811_v63 = vpop.eup %1810 }
 0x2e3   : >> { %951 = vrot.lane.b32.xlu0 %v1811_v63, %s2166_s3 }
 0x2e6   : >> { %v1813_v0 = vpop.eup %1812 }
 0x2e7   : >> { %977 = vrot.lane.b32.xlu1 %v1813_v0, %s2166_s3 }
 0x2eb   : >> { %986 = vrot.lane.b32.xlu1 %v948_v59, %s2167_s25 }
 0x2ef   : >> { %994 = vrot.lane.b32.xlu1 %v974_v62, %s2167_s25 }
 0x355   : >> { %v952_v19 = vpop.permute.xlu0 %951 }
 0x356   : >> { %v954_v20 = vmul.f32 %v952_v19, %v932_v48 }
 0x358   : >> { %982 = vrot.lane.b32.xlu0 %v954_v20, %s2168_s4 }
 0x359   : >> { %v978_v21 = vpop.permute.xlu1 %977 }
 0x35a   : >> { %v980_v22 = vmul.f32 %v978_v21, %v958_v52 }
 0x35c   : >> { %990 = vrot.lane.b32.xlu0 %v980_v22, %s2168_s4 }
 0x35d   : >> { %v987_v23 = vpop.permute.xlu1 %986  }
 0x35e   : >> { %v2857_v20 = vmov %v987_v23  ;;  %999 = vst.msk [vmem:[#allocation3] sm:$0x3] (%p607_p0), %vm997_vm3, %v987_v23 }
 0x361   : >> { %v995_v24 = vpop.permute.xlu1 %994  }
 0x362   : >> { %v2855_v22 = vmov %v995_v24  ;;  %1001 = vst.msk [vmem:[#allocation5] sm:$0x3] (%p607_p0), %vm997_vm3, %v995_v24 }
 0x3c9   : > { %609 = sbr.rel (!%p607_p0) target bundleno = 252 (0xfc), region = 156 }
 0x3ca   : >> { %v983_v25 = vpop.permute.xlu0 %982  }
 0x3cb   : >> { %v2858_v19 = vmov %v983_v25  ;;  %998 = vst.msk [vmem:[#allocation2] sm:$0x3] (%p607_p0), %vm997_vm3, %v983_v25 }
 0x3ce   : >> { %v991_v26 = vpop.permute.xlu0 %990  }
 0x3cf   : >> { %v2856_v21 = vmov %v991_v26  ;;  %1000 = vst.msk [vmem:[#allocation4] sm:$0x3] (%p607_p0), %vm997_vm3, %v991_v26 }
 0x3d0   : > { %1005 = sbr.rel (%p1444_p8) target bundleno = 1427 (0x593), region = 111  ;;  %v1014_v27 = vld [vmem:[#allocation15] sm:$0xff] (!%p1444_p8)  ;;  %v1015_v28 = vld [vmem:[#allocation15 + $0x8] sm:$0xff] (!%p1444_p8)  ;;  %s2860_s11 = sld [smem:[#allocation32_spill]] (!%p1444_p8)  ;;  %v2169_v30 = vmov (!%p1444_p8), 0.0|0.0   ;;  %v1016_v2 = vld [vmem:[#allocation15 + $0x10] sm:$0xff] (!%p1444_p8) }
 0x3d1   : > { %1592 = vmatprep.subr.bf16.mxu0 (!%p1444_p8), %v2169_v30  ;;  %1598 = vmatprep.subr.bf16.mxu1 (!%p1444_p8), %v2169_v30  ;;  %v1593_v31 = vpack.c.bf16 (!%p1444_p8), %v1015_v28, %v1014_v27  ;;  %v1017_v3 = vld [vmem:[#allocation15 + $0x18] sm:$0xff] (!%p1444_p8)  ;;  %vm2170_vm4 = vmmov (!%p1444_p8), 0   ;;  %v2171_v7 = vmov (!%p1444_p8), 0.0   ;;  %s2861_s13 = sld [smem:[#allocation34_spill]] (!%p1444_p8)  ;;  %s2862_s8 = sld [smem:[#allocation33_spill]] (!%p1444_p8)  ;;  %vm1257_vm5 = vcmask (!%p1444_p8), 25600  }
 0x3d2   : > { %1543 = vmatprep.mubr.msk.f32.mxu0 (!%p1444_p8), %vm2170_vm4, %v2171_v7  ;;  %1554 = vmatprep.mubr.msk.f32.mxu1 (!%p1444_p8), %vm2170_vm4, %v2171_v7  ;;  %v1596_v9 = vpack.c.bf16 (!%p1444_p8), %v1017_v3, %v1016_v2  ;;  %v1006_v10 = vld [vmem:[#allocation2] sm:$0x3] (!%p1444_p8)  ;;  %s2863_s19 = sld [smem:[#allocation35_spill]] (!%p1444_p8) }
 0x3d3   : > { %1594 = vmatpush3.bf16.msra.mxu0 (!%p1444_p8), %v1593_v31 }
 0x3d4   : > { %1595 = vmatprep.subr.bf16.mxu0 (!%p1444_p8), %v2169_v30 }
 0x3d6   : > { %v1010_v29 = vld [vmem:[%s2860_s11] sm:$0xff] (!%p1444_p8)  ;;  %v1011_v1 = vld [vmem:[%s2860_s11 + $0x8] sm:$0xff] (!%p1444_p8)  ;;  %v1012_v5 = vld [vmem:[%s2860_s11 + $0x10] sm:$0xff] (!%p1444_p8) }
 0x3d7   : > { %v1599_v4 = vpack.c.bf16 %v1011_v1, %v1010_v29  ;;  %v1013_v6 = vld [vmem:[%s2860_s11 + $0x18] sm:$0xff]  ;;  %v1008_v8 = vld [vmem:[#allocation4] sm:$0x3]  ;;  %1597 = vmatpush3.bf16.msra.mxu0 %v1596_v9  ;;  %v1174_v13 = vld [vmem:[%s2861_s13 + $0x8] sm:$0xff] }
 0x3d8   : > { %1814 = vtanh.f32 %v1008_v8  ;;  %v1602_v11 = vpack.c.bf16 %v1013_v6, %v1012_v5  ;;  %1604 = vmatprep.subr.bf16.mxu0 %v2169_v30  ;;  %v1173_v12 = vld [vmem:[%s2861_s13] sm:$0xff]  ;;  %v1175_v17 = vld [vmem:[%s2861_s13 + $0x10] sm:$0xff]  ;;  %v1176_v18 = vld [vmem:[%s2861_s13 + $0x18] sm:$0xff] }
 0x3d9   : > { %1600 = vmatpush3.bf16.msra.mxu1 %v1599_v4  ;;  %1816 = vtanh.f32 %v1006_v10  ;;  %v1605_v14 = vpack.c.bf16 %v1174_v13, %v1173_v12  ;;  %v1608_v32 = vpack.c.bf16 %v1176_v18, %v1175_v17  ;;  %v1447_v35 = vld [vmem:[%s2862_s8] ss:$0 sm:$0xff] }
 0x3da   : > { %1601 = vmatprep.subr.bf16.mxu1 %v2169_v30  ;;  %v1448_v40 = vld [vmem:[%s2863_s19] ss:$0 sm:$0xff] }
 0x3dd   : > { %1603 = vmatpush3.bf16.msra.mxu1 %v1602_v11 }
 0x3e2   : > { %v1815_v15 = vpop.eup %1814 }
 0x3e3   : > { %v1817_v16 = vpop.eup %1816  ;;  %1544 = vmatmul.mubr.msk.f32.vlgmr.msra.gmra.mrb[0].mxu0 %vm624_vm2, %v1815_v15 }
 0x3e4   : > { %1555 = vmatmul.mubr.msk.f32.vlgmr.msra.gmra.mrb[0].mxu1 %vm624_vm2, %v1817_v16  ;;  %1606 = vmatpush3.bf16.msra.mxu0 %v1605_v14 }
 0x3e5   : > { %1607 = vmatprep.subr.bf16.mxu0 %v2169_v30  ;;  %1565 = vmatprep.mubr.msk.f32.mxu0 %vm2170_vm4, %v2171_v7 }
 0x3e8   : > { %1609 = vmatpush3.bf16.msra.mxu0 %v1608_v32 }
 0x4b6   : > { %v1088_v33 = vpop.f32.mrb[0].mxu0 }
 0x4b7   : > { %v1161_v34 = vpop.f32.mrb[0].mxu1  ;;  %v1545_v36 = vpop.f32.mrb[1].mxu0 }
 0x4b8   : > { %v1162_v37 = vadd.f32 %v1161_v34, %v1088_v33  ;;  %v1556_v38 = vpop.f32.mrb[1].mxu1 }
 0x4ba   : > { %v1172_v39 = vadd.f32 %v1447_v35, %v1162_v37 }
 0x4bc   : > { %1566 = vmatmul.mubr.msk.f32.vlgmr.msra.gmra.mrb[2].mxu0 %vm624_vm2, %v1172_v39 }
 0x58f   : > { %v1253_v41 = vpop.f32.mrb[2].mxu0 }
 0x590   : > { %v1254_v42 = vadd.f32 %v1448_v40, %v1253_v41  ;;  %v1567_v43 = vpop.f32.mrb[3].mxu0 }
 0x592   : > { %1258 = vst.msk [vmem:[#allocation17] sm:$0x3] %vm1257_vm5, %v1254_v42 }
 0x593 PF: > { %p1669_p9 = scmp.eq.s32.totalorder %s2287_s17, 1  ;;  %s2172_s24 = smov [#allocation17]  }
 0x594   : > { %s1268_s0 = sshll.u32 %s2172_s24, 4  ;;  %s1269_s0 = int_to_ptr.vmem [resolvable:$true] %s1268_s0 }
 0x595   : > { %s1990_s14 = scalar_lea.vmem %s1269_s0, 32  ;;  %p1997_p13 = scmp.lt.s32.totalorder %s1269_s0, %s1269_s0 }
 0x596   : > { %p1991_p4 = scmp.ne.s32.totalorder %s1269_s0, %s1990_s14  ;;  %p1998_p1 = scmp.lt.s32.totalorder %s1990_s14, %s1990_s14 }
 0x598   : > { %p1992_p12 = pnand %p1991_p4, %p1669_p9  ;;  %p1999_p2 = por %p1998_p1, %p1997_p13 }
 0x59a   : > { %p1993_p3 = pneg %p1992_p12 }
 0x59c   : > { %p2000_p5 = pnand %p1999_p2, %p1993_p3 }
 0x59e   : > { %2003 = shalt.err (!%p2000_p5)
}
 0x59f   : > { %s2864_s25 = sld [smem:[#allocation36_spill]] }
 0x5a5   : > { %s2865_s4 = smov %s2864_s25  ;;  %s2004_s6 = scalar_lea.hbm %s2864_s25, 32 }
 0x5a6   : > { %p2005_p7 = scmp.ne.s32.totalorder %s2865_s4, %s2004_s6  ;;  %p2010_p6 = scmp.lt.u32.totalorder %s2004_s6, %s2865_s4 }
 0x5a8   : > { %p2006_p10 = pnand %p2005_p7, %p1669_p9 }
 0x5aa   : > { %p2007_p11 = pneg %p2006_p10 }
 0x5ac   : > { %p2012_p0 = pnand %p2010_p6, %p2007_p11 }
 0x5ae   : > { %2015 = shalt.err (!%p2012_p0)
}
 0x5af   : > { %1637 = dma.vmem_to_hbm [thread:$0]  (%p1669_p9), %s1269_s0, 32, %s2865_s4, [#allocation8]  }
 0x5b0   : > { %2093 = dma.done.wait (%p1669_p9), [#allocation8], 32  }
 0x5b1   : > { %2095 = vsyncadd (%p1669_p9), [#allocation8], 4294967264 }
 0x5b2 PF: > { %s32_s16 = sadd.s32 1, %s2130_s16   ;;  %s2866_s19 = smov %s2444_s28 }
 0x5b3   : > { %p29_p8 = scmp.ge.s32.totalorder %s32_s16, 4   ;;  %s2867_s25 = smov %s2102_s26 }
 0x5b4   : > { %s2868_s26 = smov %s2106_s27  ;;  %s2869_s27 = smov %s2502_s20 }
 0x5b5   : > { %s2870_s28 = smov %s2114_s29  ;;  %s2871_s29 = smov %s2118_s30 }
 0x5b6   : > { %s2872_s30 = smov %s2866_s19  ;;  %s2873_s14 = smov %s2126_s15 }
 0x5b7   : > { %s2874_s15 = smov %s2876_s2  ;;  %31 = sbr.rel (!%p29_p8) target bundleno = 23 (0x17), region = 167 }
 0x5be   :  { %1281 = vsyncpa [#allocation7], 1 }
 0x5bf   :  { %1283 = vsyncpa [#allocation7 + $0x1], 1 }
 0x5c0   :  { %1284 = vsyncpa [#allocation10], 1 }
 0x5c1   :  { %1286 = vsyncpa [#allocation10 + $0x1], 1 }
 0x5c2   :  { %1287 = vsyncpa [#allocation13], 1 }
 0x5c3   :  { %1288 = vsyncpa [#allocation16], 1 }
 0x5c4   :  { %1289 = vsyncpa [#allocation8], 1 }
 0x5c5   :  { %1291 = vsyncpa [#allocation8 + $0x1], 1 }

</bundles_post_ra>
